<compile_context>
chip_gen: v7x
topology: tpu7x:2x2x1
jax: 0.10.0
libtpu: 0.0.40
codegen_flags: <defaults>
</compile_context>

<pallas_src>
import jax
import jax.numpy as jnp
from jax.experimental import pallas as pl
from jax.experimental.pallas import tpu as pltpu


# ------------------------------ tiling constants --------------------------- #

_LANE = 1024              # lane-dense last dim (multiple of 128, >= 512 lanes)
_MAX_ROWS_PER_TILE = 512  # 512 x 1024 f32 tile = 2 MiB per operand buffer


# --------------------------------- kernel ---------------------------------- #

def _blend_kernel(coef_ref, key_ref, value_ref, out_ref):
    """out = coef[0] * key + coef[1] * value.  coef lives in SMEM (f32)."""
    ck = coef_ref[0]
    cv = coef_ref[1]
    out_ref[...] = (
        ck * key_ref[...].astype(jnp.float32)
        + cv * value_ref[...].astype(jnp.float32)
    ).astype(out_ref.dtype)


# -------------------------------- wrapper ----------------------------------- #

def _blend_tiled(coef, key2, value2, tm, lane):
    rows_pad = key2.shape[0]
    grid = (rows_pad // tm,)

    tile_bytes = tm * lane * key2.dtype.itemsize
    # 3 operands x 2 pipeline buffers per tile + headroom; clamp to v7x's
    # 64 MiB physical VMEM so the same build is safe on every generation.
    vmem_budget = min(64 * 1024 * 1024,
                      max(32 * 1024 * 1024, 3 * 2 * tile_bytes + 8 * 1024 * 1024))

    tile_spec = pl.BlockSpec((tm, lane), lambda i: (i, 0))

    return pl.pallas_call(
        _blend_kernel,
        out_shape=jax.ShapeDtypeStruct(key2.shape, key2.dtype),
        grid=grid,
        in_specs=[
            pl.BlockSpec(memory_space=pltpu.MemorySpace.SMEM),  # coef scalars
            tile_spec,                                          # key tile
            tile_spec,                                          # value tile
        ],
        out_specs=tile_spec,
        compiler_params=pltpu.CompilerParams(
            dimension_semantics=("parallel",),
            vmem_limit_bytes=vmem_budget,
        ),
    )(coef, key2, value2)


def simple_attention(key, value, *, use_gamma=False, alpha=0.5, gamma=None):
    """Pallas implementation of SimpleAttention.forward.

    key, value: identically shaped arrays (e.g. NCHW feature maps).
    use_gamma:  if True, out = gamma * key + value (gamma defaults to ones(1)),
                otherwise out = alpha * value + (1 - alpha) * key.
    """
    assert key.shape == value.shape, "key/value must have identical shapes"
    dtype = key.dtype
    orig_shape = key.shape
    total = key.size

    # Scalar coefficients (always f32 in SMEM): out = coef[0]*key + coef[1]*value
    if use_gamma:
        if gamma is None:
            gamma = jnp.ones((1,), dtype=jnp.float32)  # nn.Parameter(torch.ones(1))
        g = jnp.asarray(gamma, dtype=jnp.float32).reshape(-1)[0]
        coef = jnp.stack([g, jnp.asarray(1.0, dtype=jnp.float32)])
    else:
        a = jnp.asarray(alpha, dtype=jnp.float32)
        coef = jnp.stack([1.0 - a, a])

    # Lane-dense 2D view: flatten, pad the tail with zeros so the array is
    # exactly (rows_pad, _LANE) with rows_pad a multiple of the row-tile size
    # (full, unmasked blocks everywhere; padded region is sliced off at the end).
    lane = _LANE
    rows = -(-total // lane)                                   # cdiv
    tm = min(_MAX_ROWS_PER_TILE, max(8, ((rows + 7) // 8) * 8))
    rows_pad = -(-rows // tm) * tm
    padded = rows_pad * lane

    key_f = key.reshape(-1)
    val_f = value.reshape(-1)
    if padded != total:
        pad = padded - total
        key_f = jnp.pad(key_f, (0, pad))
        val_f = jnp.pad(val_f, (0, pad))
    key2 = key_f.reshape(rows_pad, lane)
    val2 = val_f.reshape(rows_pad, lane)

    out2 = _blend_tiled(coef, key2, val2, tm, lane)
    return out2.reshape(-1)[:total].reshape(orig_shape)


# ---------------------------------- demo ------------------------------------ #

if __name__ == "__main__":
    rng = jax.random.PRNGKey(0)
    k_key, k_val, k_key2, k_val2 = jax.random.split(rng, 4)

    # --- small NCHW input, 128-aligned spatial ---
    shape = (2, 4, 16, 16)  # N, C, H, W
    key = jax.random.normal(k_key, shape, dtype=jnp.float32)
    value = jax.random.normal(k_val, shape, dtype=jnp.float32)

    # default branch: alpha blend (use_gamma=False, alpha=0.5)
    alpha = 0.5
    out_alpha = jax.block_until_ready(
        simple_attention(key, value, use_gamma=False, alpha=alpha))
    ref_alpha = alpha * value + (1.0 - alpha) * key
    assert out_alpha.shape == shape and out_alpha.dtype == jnp.float32
    assert jnp.allclose(out_alpha, ref_alpha, atol=1e-6, rtol=1e-6)

    # gamma branch: gamma initialized deterministically to ones(1)
    gamma = jnp.ones((1,), dtype=jnp.float32)
    out_gamma = jax.block_until_ready(
        simple_attention(key, value, use_gamma=True, gamma=gamma))
    ref_gamma = gamma[0] * key + value
    assert jnp.allclose(out_gamma, ref_gamma, atol=1e-6, rtol=1e-6)

    # --- non-128-aligned spatial (exercises the padded lane-dense path) ---
    shape2 = (2, 8, 25, 38)  # H*W = 950, not a multiple of 128
    key_b = jax.random.normal(k_key2, shape2, dtype=jnp.float32)
    val_b = jax.random.normal(k_val2, shape2, dtype=jnp.float32)
    out_b = jax.block_until_ready(
        simple_attention(key_b, val_b, use_gamma=False, alpha=0.3))
    ref_b = 0.3 * val_b + 0.7 * key_b
    assert out_b.shape == shape2
    assert jnp.allclose(out_b, ref_b, atol=1e-6, rtol=1e-6)

    print("KERNEL_OK")
</pallas_src>

<mosaic_0001>
module attributes {stable_mosaic.version = 11 : i64} {
  func.func @_blend_kernel(%arg0: i32, %arg1: memref<2xf32, #tpu.memory_space<smem>>, %arg2: memref<8x1024xf32, #tpu.memory_space<vmem>>, %arg3: memref<8x1024xf32, #tpu.memory_space<vmem>>, %arg4: memref<8x1024xf32, #tpu.memory_space<vmem>>) attributes {dimension_semantics = [#tpu.dimension_semantics<parallel>], iteration_bounds = array<i64: 1>, scalar_prefetch = 0 : i64, scratch_operands = 0 : i64, tpu.core_type = #tpu.core_type<tc>, window_params = [{transform_indices = @transform_0, window_bounds = array<i64: 2>}, {transform_indices = @transform_1, window_bounds = array<i64: 8, 1024>}, {transform_indices = @transform_2, window_bounds = array<i64: 8, 1024>}, {transform_indices = @transform_3, window_bounds = array<i64: 8, 1024>}]} {
    %c0 = arith.constant 0 : index
    %0 = memref.load %arg1[%c0] : memref<2xf32, #tpu.memory_space<smem>>
    %c1 = arith.constant 1 : index
    %1 = memref.load %arg1[%c1] : memref<2xf32, #tpu.memory_space<smem>>
    %c0_0 = arith.constant 0 : index
    %c0_1 = arith.constant 0 : index
    %2 = vector.load %arg2[%c0_0, %c0_1] : memref<8x1024xf32, #tpu.memory_space<vmem>>, vector<8x1024xf32>
    %3 = vector.broadcast %0 : f32 to vector<8x1024xf32>
    %4 = arith.mulf %3, %2 : vector<8x1024xf32>
    %c0_2 = arith.constant 0 : index
    %c0_3 = arith.constant 0 : index
    %5 = vector.load %arg3[%c0_2, %c0_3] : memref<8x1024xf32, #tpu.memory_space<vmem>>, vector<8x1024xf32>
    %6 = vector.broadcast %1 : f32 to vector<8x1024xf32>
    %7 = arith.mulf %6, %5 : vector<8x1024xf32>
    %8 = arith.addf %4, %7 : vector<8x1024xf32>
    %c0_4 = arith.constant 0 : index
    %c0_5 = arith.constant 0 : index
    %9 = vector.load %arg4[%c0_4, %c0_5] : memref<8x1024xf32, #tpu.memory_space<vmem>>, vector<8x1024xf32>
    tpu.vector_store %arg4[%c0_4, %c0_5], %8 {strides = array<i32>} : memref<8x1024xf32, #tpu.memory_space<vmem>>, vector<8x1024xf32>,
    return
  }
  func.func @transform_0(%arg0: i32) -> i32 {
    %c0_i32 = arith.constant 0 : i32
    %c0_i32_0 = arith.constant 0 : i32
    return %c0_i32 : i32
  }
  func.func @transform_1(%arg0: i32) -> (i32, i32) {
    %c0_i32 = arith.constant 0 : i32
    %c0_i32_0 = arith.constant 0 : i32
    return %arg0, %c0_i32 : i32, i32
  }
  func.func @transform_2(%arg0: i32) -> (i32, i32) {
    %c0_i32 = arith.constant 0 : i32
    %c0_i32_0 = arith.constant 0 : i32
    return %arg0, %c0_i32 : i32, i32
  }
  func.func @transform_3(%arg0: i32) -> (i32, i32) {
    %c0_i32 = arith.constant 0 : i32
    %c0_i32_0 = arith.constant 0 : i32
    return %arg0, %c0_i32 : i32, i32
  }
}

</mosaic_0001>

<bundles_post_ra>
// kernel: tpu_custom_call.1
= control target key start
LH: loop header
LB: loop body
LE: loop exit
PB: predicated region body
PF: predicated region fallthrough
CT: control target
= control target key end

     0   :  { %8 = vsyncpa [#allocation5], 0  ;;  %s280_s0 = inlined_call_operand.hbm [shape: f32[2], index: 0, kind: input, shape index: {}]   ;;  %s281_s1 = inlined_call_operand.hbm [shape: f32[8,1024], index: 1, kind: input, shape index: {}]   ;;  %s282_s2 = inlined_call_operand.hbm [shape: f32[8,1024], index: 2, kind: input, shape index: {}]   ;;  %s283_s3 = inlined_call_operand.hbm [shape: f32[8,1024], index: 3, kind: output, shape index: {}]  }
   0x1   :  { %9 = vsyncpa [#allocation3], 0 }
   0x2   :  { %10 = vsyncpa [#allocation8], 0 }
   0x3   :  { %11 = vsyncpa [#allocation4], 0  ;;  %s124_s14 = scalar_lea.hbm %s280_s0, 16 }
   0x4   :  { %p125_p0 = scmp.ne.s32.totalorder %s280_s0, %s124_s14  ;;  %p128_p1 = scmp.lt.u32.totalorder %s124_s14, %s280_s0 }
   0x6   :  { %p130_p2 = pnand %p128_p1, %p125_p0 }
   0x8   :  { %133 = shalt.err (!%p130_p2)
}
   0x9   :  { %s208_s19 = smov [#allocation2]   ;;  %s209_s22 = smov [#allocation6]  }
   0xa   :  { %19 = dma.hbm_to_smem %s280_s0, 16, %s208_s19, [#allocation5]  }
   0xb   :  { %s26_s23 = sshll.u32 %s209_s22, 4  ;;  %s210_s24 = smov [#allocation7]   ;;  %s27_s23 = int_to_ptr.vmem [resolvable:$true] %s26_s23 }
   0xc   :  { %s36_s25 = sshll.u32 %s210_s24, 4  ;;  %s134_s28 = scalar_lea.hbm %s281_s1, 1024  ;;  %s37_s25 = int_to_ptr.vmem [resolvable:$true] %s36_s25 }
   0xd   :  { %p135_p3 = scmp.ne.s32.totalorder %s281_s1, %s134_s28  ;;  %p138_p4 = scmp.lt.u32.totalorder %s134_s28, %s281_s1 }
   0xf   :  { %p140_p5 = pnand %p138_p4, %p135_p3 }
  0x11   :  { %143 = shalt.err (!%p140_p5)
}
  0x12   :  { %s144_s0 = scalar_lea.vmem %s27_s23, 1024  ;;  %p149_p7 = scmp.lt.s32.totalorder %s27_s23, %s27_s23 }
  0x13   :  { %p145_p6 = scmp.ne.s32.totalorder %s27_s23, %s144_s0  ;;  %p150_p8 = scmp.lt.s32.totalorder %s144_s0, %s144_s0 }
  0x15   :  { %p151_p9 = por %p150_p8, %p149_p7 }
  0x17   :  { %p152_p10 = pnand %p151_p9, %p145_p6 }
  0x19   :  { %155 = shalt.err (!%p152_p10)
}
  0x1a   :  { %29 = dma.hbm_to_vmem [thread:$0]  %s281_s1, 1024, %s27_s23, [#allocation3]  }
  0x1b   :  { %s156_s10 = scalar_lea.hbm %s282_s2, 1024 }
  0x1c   :  { %p157_p11 = scmp.ne.s32.totalorder %s282_s2, %s156_s10  ;;  %p160_p12 = scmp.lt.u32.totalorder %s156_s10, %s282_s2 }
  0x1e   :  { %p162_p13 = pnand %p160_p12, %p157_p11 }
  0x20   :  { %165 = shalt.err (!%p162_p13)
}
  0x21   :  { %s166_s15 = scalar_lea.vmem %s37_s25, 1024  ;;  %p171_p1 = scmp.lt.s32.totalorder %s37_s25, %s37_s25 }
  0x22   :  { %p167_p0 = scmp.ne.s32.totalorder %s37_s25, %s166_s15  ;;  %p172_p2 = scmp.lt.s32.totalorder %s166_s15, %s166_s15 }
  0x24   :  { %p173_p3 = por %p172_p2, %p171_p1 }
  0x26   :  { %p174_p4 = pnand %p173_p3, %p167_p0 }
  0x28   :  { %177 = shalt.err (!%p174_p4)
}
  0x29   :  { %39 = dma.hbm_to_vmem [thread:$0]  %s282_s2, 1024, %s37_s25, [#allocation8]  }
  0x2a   :  { %200 = dma.done.wait [#allocation5], 16  }
  0x2b   :  { %201 = vsyncadd [#allocation5], 4294967280 }
  0x2c   :  { %202 = dma.done.wait [#allocation3], 1024  }
  0x2d   :  { %203 = vsyncadd [#allocation3], 4294966272 }
  0x2e   :  { %204 = dma.done.wait [#allocation8], 1024  }
  0x2f   :  { %205 = vsyncadd [#allocation8], 4294966272 }
  0x30   :  { %49 = sfence }
  0x31   :  { %s50_s17 = sld [smem:[#allocation2]]  ;;  %s119_s18 = sld [smem:[#allocation2 + $0x1]]  ;;  %v52_v0 = vld [vmem:[#allocation6] sm:$0xff]  ;;  %v53_v2 = vld [vmem:[#allocation6 + $0x8] sm:$0xff]  ;;  %v54_v4 = vld [vmem:[#allocation6 + $0x10] sm:$0xff] }
  0x32   :  { %v69_v1 = vld [vmem:[#allocation7] sm:$0xff]  ;;  %v70_v3 = vld [vmem:[#allocation7 + $0x8] sm:$0xff]  ;;  %v71_v5 = vld [vmem:[#allocation7 + $0x10] sm:$0xff]  ;;  %s211_s2 = smov [#allocation9]  }
  0x33   :  { %v55_v6 = vld [vmem:[#allocation6 + $0x18] sm:$0xff]  ;;  %v56_v10 = vld [vmem:[#allocation6 + $0x20] sm:$0xff]  ;;  %v57_v16 = vld [vmem:[#allocation6 + $0x28] sm:$0xff]  ;;  %s108_s19 = sshll.u32 %s211_s2, 4  ;;  %s109_s19 = int_to_ptr.vmem [resolvable:$true] %s108_s19 }
  0x34   :  { %v72_v7 = vld [vmem:[#allocation7 + $0x18] sm:$0xff]  ;;  %v73_v11 = vld [vmem:[#allocation7 + $0x20] sm:$0xff]  ;;  %v74_v17 = vld [vmem:[#allocation7 + $0x28] sm:$0xff]  ;;  %s178_s20 = scalar_lea.vmem %s109_s19, 1024  ;;  %p183_p6 = scmp.lt.s32.totalorder %s109_s19, %s109_s19 }
  0x35   :  { %v58_v22 = vld [vmem:[#allocation6 + $0x30] sm:$0xff]  ;;  %v59_v24 = vld [vmem:[#allocation6 + $0x38] sm:$0xff]  ;;  %p179_p5 = scmp.ne.s32.totalorder %s109_s19, %s178_s20  ;;  %p184_p7 = scmp.lt.s32.totalorder %s178_s20, %s178_s20 }
  0x36   :  { %v75_v23 = vld [vmem:[#allocation7 + $0x30] sm:$0xff]  ;;  %v76_v29 = vld [vmem:[#allocation7 + $0x38] sm:$0xff] }
  0x37   :  { %v60_v8 = vstv %s50_s17  ;;  %v77_v9 = vstv %s119_s18  ;;  %p185_p8 = por %p184_p7, %p183_p6 }
  0x38   :  { %v61_v12 = vmul.f32 %v60_v8, %v52_v0  ;;  %v78_v13 = vmul.f32 %v77_v9, %v69_v1  ;;  %v62_v14 = vmul.f32 %v60_v8, %v53_v2  ;;  %v79_v15 = vmul.f32 %v77_v9, %v70_v3 }
  0x39   :  { %v63_v18 = vmul.f32 %v60_v8, %v54_v4  ;;  %v80_v19 = vmul.f32 %v77_v9, %v71_v5  ;;  %v64_v20 = vmul.f32 %v60_v8, %v55_v6  ;;  %v81_v21 = vmul.f32 %v77_v9, %v72_v7  ;;  %p186_p9 = pnand %p185_p8, %p179_p5 }
  0x3a   :  { %v86_v25 = vadd.f32 %v78_v13, %v61_v12  ;;  %v87_v26 = vadd.f32 %v79_v15, %v62_v14  ;;  %v65_v27 = vmul.f32 %v60_v8, %v56_v10  ;;  %v82_v28 = vmul.f32 %v77_v9, %v73_v11 }
  0x3b   :  { %v88_v30 = vadd.f32 %v80_v19, %v63_v18  ;;  %v89_v31 = vadd.f32 %v81_v21, %v64_v20  ;;  %v66_v32 = vmul.f32 %v60_v8, %v57_v16  ;;  %v83_v33 = vmul.f32 %v77_v9, %v74_v17 }
  0x3c   :  { %94 = vst [vmem:[#allocation9] sm:$0xff] %v86_v25  ;;  %95 = vst [vmem:[#allocation9 + $0x8] sm:$0xff] %v87_v26  ;;  %v90_v34 = vadd.f32 %v82_v28, %v65_v27  ;;  %v67_v35 = vmul.f32 %v60_v8, %v58_v22  ;;  %v84_v36 = vmul.f32 %v77_v9, %v75_v23 }
  0x3d   :  { %v68_v37 = vmul.f32 %v60_v8, %v59_v24  ;;  %96 = vst [vmem:[#allocation9 + $0x10] sm:$0xff] %v88_v30  ;;  %97 = vst [vmem:[#allocation9 + $0x18] sm:$0xff] %v89_v31  ;;  %v91_v38 = vadd.f32 %v83_v33, %v66_v32  ;;  %v85_v39 = vmul.f32 %v77_v9, %v76_v29 }
  0x3e   :  { %98 = vst [vmem:[#allocation9 + $0x20] sm:$0xff] %v90_v34  ;;  %v92_v40 = vadd.f32 %v84_v36, %v67_v35 }
  0x3f   :  { %99 = vst [vmem:[#allocation9 + $0x28] sm:$0xff] %v91_v38  ;;  %v93_v41 = vadd.f32 %v85_v39, %v68_v37 }
  0x40   :  { %100 = vst [vmem:[#allocation9 + $0x30] sm:$0xff] %v92_v40 }
  0x41   :  { %101 = vst [vmem:[#allocation9 + $0x38] sm:$0xff] %v93_v41 }
  0x42   :  { %189 = shalt.err (!%p186_p9)
}
  0x43   :  { %s190_s23 = scalar_lea.hbm %s283_s3, 1024 }
  0x44   :  { %p191_p10 = scmp.ne.s32.totalorder %s283_s3, %s190_s23  ;;  %p194_p11 = scmp.lt.u32.totalorder %s190_s23, %s283_s3 }
  0x46   :  { %p196_p12 = pnand %p194_p11, %p191_p10 }
  0x48   :  { %199 = shalt.err (!%p196_p12)
}
  0x49   :  { %111 = dma.vmem_to_hbm [thread:$0]  %s109_s19, 1024, %s283_s3, [#allocation4]  }
  0x4a   :  { %206 = dma.done.wait [#allocation4], 1024  }
  0x4b   :  { %207 = vsyncadd [#allocation4], 4294966272 }
  0x4c   :  { %115 = vsyncpa [#allocation3], 1 }
  0x4d   :  { %116 = vsyncpa [#allocation8], 1 }
  0x4e   :  { %117 = vsyncpa [#allocation4], 1 }
  0x4f   :  { %118 = vsyncpa [#allocation5], 1 }

</bundles_post_ra>
